<compile_context>
chip_gen: v7x
topology: tpu7x:2x2x1
jax: 0.10.0
libtpu: 0.0.40
codegen_flags: <defaults>
</compile_context>

<pallas_src>
import jax
import jax.numpy as jnp
from jax import lax
from jax.experimental import pallas as pl
from jax.experimental.pallas import tpu as pltpu


def _mlp_kernel(x_ref, w1_ref, b1_ref, w2_ref, b2_ref, o_ref):
    # x:  [TILE_B, D_in] bf16   w1: [D_in, H] bf16   b1: [1, H] f32
    # w2: [H, D_out]     bf16   b2: [1, 1]    f32 (SMEM scalar)
    # o:  [D_out, TILE_B] f32   (lane-dense transposed output)
    h = jnp.dot(x_ref[...], w1_ref[...], preferred_element_type=jnp.float32)
    h = jnp.maximum(h + b1_ref[...], 0.0)            # f32 epilogue on the VPU
    # Transposed second matmul: [D_out, TILE_B] = w2^T @ h^T  (lane-dense store).
    y_t = lax.dot_general(
        w2_ref[...], h.astype(w2_ref.dtype),
        dimension_numbers=(((0,), (1,)), ((), ())),
        preferred_element_type=jnp.float32)
    o_ref[...] = (y_t + b2_ref[0, 0]).astype(o_ref.dtype)


def dummy_classifier_forward(x, w1, b1, w2, b2, *, tile_b=1024):
    """x: [B, D_in] f32; w1: [D_in, H]; b1: [H]; w2: [H, D_out]; b2: [D_out]."""
    B, D_in = x.shape
    H = w1.shape[1]
    D_out = w2.shape[1]
    # SMEM-scalar bias path assumes a single output unit (the module default).
    assert D_out == 1, "kernel written for output_size=1 (pass b2 via VMEM for D_out>1)"

    # bf16 streaming operands (kernel is HBM-bandwidth-bound); f32 accumulation in-kernel.
    x_bf = x.astype(jnp.bfloat16)
    w1_bf = w1.astype(jnp.bfloat16)
    w2_bf = w2.astype(jnp.bfloat16)

    # Batch tile: one block if B is small, otherwise a multiple of 128 so the
    # transposed output block is lane-dense and x's sublane dim is a multiple of 8.
    if B <= tile_b:
        tile_b = B
    else:
        tile_b = max(128, (tile_b // 128) * 128)
    grid = (pl.cdiv(B, tile_b),)

    out_t = pl.pallas_call(
        _mlp_kernel,
        out_shape=jax.ShapeDtypeStruct((D_out, B), jnp.float32),
        grid=grid,
        in_specs=[
            pl.BlockSpec((tile_b, D_in), lambda i: (i, 0)),   # x tile (streamed)
            pl.BlockSpec((D_in, H), lambda i: (0, 0)),        # w1 (resident)
            pl.BlockSpec((1, H), lambda i: (0, 0)),           # b1 (resident)
            pl.BlockSpec((H, D_out), lambda i: (0, 0)),       # w2 (resident)
            pl.BlockSpec((1, 1), lambda i: (0, 0),
                         memory_space=pltpu.MemorySpace.SMEM),  # b2 scalar
        ],
        out_specs=pl.BlockSpec((D_out, tile_b), lambda i: (0, i)),  # lane-dense slab
        compiler_params=pltpu.CompilerParams(
            dimension_semantics=("parallel",)),               # megacore on v7x
    )(x_bf, w1_bf, b1.reshape(1, H), w2_bf, b2.reshape(1, 1))

    # (1, B) -> (B, 1): same row-major memory layout, free reshape.
    return out_t.reshape(B, D_out)


def init_params(key, input_size=10, hidden=20, output_size=1):
    """Deterministic init mimicking nn.Linear's uniform(-1/sqrt(fan_in), 1/sqrt(fan_in))."""
    k1, k2, k3, k4 = jax.random.split(key, 4)
    bound1 = 1.0 / jnp.sqrt(input_size)
    bound2 = 1.0 / jnp.sqrt(hidden)
    # Stored directly in [in, out] layout (i.e. PyTorch weight transposed).
    w1 = jax.random.uniform(k1, (input_size, hidden), jnp.float32, -bound1, bound1)
    b1 = jax.random.uniform(k2, (hidden,), jnp.float32, -bound1, bound1)
    w2 = jax.random.uniform(k3, (hidden, output_size), jnp.float32, -bound2, bound2)
    b2 = jax.random.uniform(k4, (output_size,), jnp.float32, -bound2, bound2)
    return w1, b1, w2, b2


if __name__ == "__main__":
    key = jax.random.PRNGKey(0)
    k_x, k_p = jax.random.split(key)

    B, D_in, H, D_out = 512, 10, 20, 1          # small, but exercises a 4-step grid
    x = jax.random.normal(k_x, (B, D_in), jnp.float32)
    w1, b1, w2, b2 = init_params(k_p, input_size=D_in, hidden=H, output_size=D_out)

    out = dummy_classifier_forward(x, w1, b1, w2, b2, tile_b=128)
    out = jax.block_until_ready(out)
    assert out.shape == (B, D_out)

    # Reference with the same bf16 operand / f32 accumulation recipe.
    x_bf, w1_bf, w2_bf = (a.astype(jnp.bfloat16) for a in (x, w1, w2))
    h_ref = jnp.maximum(
        jnp.dot(x_bf, w1_bf, preferred_element_type=jnp.float32) + b1, 0.0)
    ref = jnp.dot(h_ref.astype(jnp.bfloat16), w2_bf,
                  preferred_element_type=jnp.float32) + b2
    assert jnp.allclose(out, ref, atol=1e-3, rtol=1e-3)

    # Coarse sanity check against the pure-f32 PyTorch-equivalent forward.
    ref_f32 = jnp.maximum(x @ w1 + b1, 0.0) @ w2 + b2
    assert jnp.allclose(out, ref_f32, atol=5e-2, rtol=5e-2)

    print("KERNEL_OK")
</pallas_src>

<mosaic_0001>
module attributes {stable_mosaic.version = 11 : i64} {
  func.func @_mlp_kernel(%arg0: i32, %arg1: memref<128x10xbf16, #tpu.memory_space<vmem>>, %arg2: memref<10x20xbf16, #tpu.memory_space<vmem>>, %arg3: memref<1x20xf32, #tpu.memory_space<vmem>>, %arg4: memref<20x1xbf16, #tpu.memory_space<vmem>>, %arg5: memref<1x1xf32, #tpu.memory_space<smem>>, %arg6: memref<1x128xf32, #tpu.memory_space<vmem>>) attributes {dimension_semantics = [#tpu.dimension_semantics<parallel>], iteration_bounds = array<i64: 4>, scalar_prefetch = 0 : i64, scratch_operands = 0 : i64, tpu.core_type = #tpu.core_type<tc>, window_params = [{transform_indices = @transform_0, window_bounds = array<i64: 128, 10>}, {pipeline_mode = #tpu.pipeline_mode<synchronous>, transform_indices = @transform_1, window_bounds = array<i64: 10, 20>}, {pipeline_mode = #tpu.pipeline_mode<synchronous>, transform_indices = @transform_2, window_bounds = array<i64: 1, 20>}, {pipeline_mode = #tpu.pipeline_mode<synchronous>, transform_indices = @transform_3, window_bounds = array<i64: 20, 1>}, {transform_indices = @transform_4, window_bounds = array<i64: 1, 1>}, {transform_indices = @transform_5, window_bounds = array<i64: 1, 128>}]} {
    %c0 = arith.constant 0 : index
    %c0_0 = arith.constant 0 : index
    %0 = vector.load %arg1[%c0, %c0_0] : memref<128x10xbf16, #tpu.memory_space<vmem>>, vector<128x10xbf16>
    %c0_1 = arith.constant 0 : index
    %c0_2 = arith.constant 0 : index
    %1 = vector.load %arg2[%c0_1, %c0_2] : memref<10x20xbf16, #tpu.memory_space<vmem>>, vector<10x20xbf16>
    %cst = arith.constant dense<0.000000e+00> : vector<128x20xf32>
    %2 = tpu.matmul %0, %1, %cst {dimension_numbers = #tpu.dot_dimension_numbers<[1], [0], [0], [1], [0, 0, 1, 1], [], []>} : vector<128x10xbf16>, vector<10x20xbf16>, vector<128x20xf32> -> vector<128x20xf32>
    %c0_3 = arith.constant 0 : index
    %c0_4 = arith.constant 0 : index
    %3 = vector.load %arg3[%c0_3, %c0_4] : memref<1x20xf32, #tpu.memory_space<vmem>>, vector<1x20xf32>
    %4 = vector.broadcast %3 : vector<1x20xf32> to vector<128x20xf32>
    %5 = arith.addf %2, %4 : vector<128x20xf32>
    %cst_5 = arith.constant 0.000000e+00 : f32
    %6 = vector.broadcast %cst_5 : f32 to vector<128x20xf32>
    %7 = arith.maximumf %5, %6 : vector<128x20xf32>
    %c0_6 = arith.constant 0 : index
    %c0_7 = arith.constant 0 : index
    %8 = vector.load %arg4[%c0_6, %c0_7] : memref<20x1xbf16, #tpu.memory_space<vmem>>, vector<20x1xbf16>
    %9 = arith.truncf %7 : vector<128x20xf32> to vector<128x20xbf16>
    %cst_8 = arith.constant dense<0.000000e+00> : vector<1x128xf32>
    %10 = tpu.matmul %8, %9, %cst_8 {dimension_numbers = #tpu.dot_dimension_numbers<[0], [1], [1], [0], [0, 1, 1, 0], [], []>} : vector<20x1xbf16>, vector<128x20xbf16>, vector<1x128xf32> -> vector<1x128xf32>
    %c0_9 = arith.constant 0 : index
    %c0_10 = arith.constant 0 : index
    %11 = memref.load %arg5[%c0_9, %c0_10] : memref<1x1xf32, #tpu.memory_space<smem>>
    %12 = vector.broadcast %11 : f32 to vector<1x128xf32>
    %13 = arith.addf %10, %12 : vector<1x128xf32>
    %c0_11 = arith.constant 0 : index
    %c0_12 = arith.constant 0 : index
    %14 = vector.load %arg6[%c0_11, %c0_12] : memref<1x128xf32, #tpu.memory_space<vmem>>, vector<1x128xf32>
    tpu.vector_store %arg6[%c0_11, %c0_12], %13 {strides = array<i32>} : memref<1x128xf32, #tpu.memory_space<vmem>>, vector<1x128xf32>,
    return
  }
  func.func @transform_0(%arg0: i32) -> (i32, i32) {
    %c0_i32 = arith.constant 0 : i32
    %c0_i32_0 = arith.constant 0 : i32
    return %arg0, %c0_i32 : i32, i32
  }
  func.func @transform_1(%arg0: i32) -> (i32, i32) {
    %c0_i32 = arith.constant 0 : i32
    %c0_i32_0 = arith.constant 0 : i32
    %c0_i32_1 = arith.constant 0 : i32
    return %c0_i32, %c0_i32_0 : i32, i32
  }
  func.func @transform_2(%arg0: i32) -> (i32, i32) {
    %c0_i32 = arith.constant 0 : i32
    %c0_i32_0 = arith.constant 0 : i32
    %c0_i32_1 = arith.constant 0 : i32
    return %c0_i32, %c0_i32_0 : i32, i32
  }
  func.func @transform_3(%arg0: i32) -> (i32, i32) {
    %c0_i32 = arith.constant 0 : i32
    %c0_i32_0 = arith.constant 0 : i32
    %c0_i32_1 = arith.constant 0 : i32
    return %c0_i32, %c0_i32_0 : i32, i32
  }
  func.func @transform_4(%arg0: i32) -> (i32, i32) {
    %c0_i32 = arith.constant 0 : i32
    %c0_i32_0 = arith.constant 0 : i32
    %c0_i32_1 = arith.constant 0 : i32
    return %c0_i32, %c0_i32_0 : i32, i32
  }
  func.func @transform_5(%arg0: i32) -> (i32, i32) {
    %c0_i32 = arith.constant 0 : i32
    %c0_i32_0 = arith.constant 0 : i32
    return %c0_i32, %arg0 : i32, i32
  }
}

</mosaic_0001>

<bundles_post_ra>
// kernel: tpu_custom_call.1
= control target key start
LH: loop header
LB: loop body
LE: loop exit
PB: predicated region body
PF: predicated region fallthrough
CT: control target
= control target key end

     0   :  { %s991_s0 = inlined_call_operand.vmem [shape: bf16[512,10], index: 0, kind: input, shape index: {}]   ;;  %s992_s1 = inlined_call_operand.vmem [shape: bf16[10,20], index: 1, kind: input, shape index: {}]   ;;  %s993_s2 = inlined_call_operand.vmem [shape: f32[1,20], index: 2, kind: input, shape index: {}]   ;;  %s994_s3 = inlined_call_operand.vmem [shape: bf16[20,1], index: 3, kind: input, shape index: {}]   ;;  %s995_s4 = inlined_call_operand.<no memory space> [shape: f32[1,1], index: 4, kind: input, shape index: {}]   ;;  %s996_s5 = inlined_call_operand.hbm [shape: f32[1,512], index: 5, kind: output, shape index: {}]  }
   0x1   :  { %10 = sst [smem:[#allocation2]] %s995_s4 }
   0x2   :  { %11 = vsyncpa [#allocation4], 0 }
   0x3   :  { %13 = vsyncpa [#allocation4 + $0x1], 0  ;;  %s854_s20 = smov 0   ;;  %s856_s21 = smov 0  }
   0x4   :  { %s858_s22 = smov 0   ;;  %s860_s23 = smov 0  }
   0x5 LB: > { %s613_s4 = sadd.s32 4294967295, %s816_s23   ;;  %s614_s24 = sadd.s32 4294967294, %s816_s23   ;;  %s816_s23 = sphi %s860_s23, %s1002_s23   ;;  %s812_s22 = sphi %s858_s22, %s1001_s22   ;;  %s808_s21 = sphi %s856_s21, %s1000_s21   ;;  %s804_s20 = sphi %s854_s20, %s999_s20  }
   0x6   : > { %s877_s25 = sadd.s32 1, %s816_s23   ;;  %s136_s26 = sadd.s32 1, %s812_s22 }
   0x7   : > { %s133_s27 = ssub.s32 %s816_s23, %s877_s25  ;;  %p146_p0 = scmp.ne.s32.totalorder %s812_s22, %s808_s21 }
   0x8   : > { %p134_p1 = scmp.eq.s32.totalorder %s133_s27, 0  ;;  %p147_p2 = scmp.eq.s32.totalorder %s613_s4, 3 }
   0x9   : > { %p152_p3 = scmp.ne.s32.totalorder %s808_s21, %s804_s20  ;;  %p153_p4 = scmp.eq.s32.totalorder %s614_s24, 3 }
   0xa   : > { %s887_s28 = scalar_select %p134_p1, %s812_s22, %s136_s26  }
   0xb   : > { %p889_p5 = por %p147_p2, %p146_p0  ;;  %p893_p6 = por %p153_p4, %p152_p3 }
   0xc   : > { %p617_p7 = scmp.ge.s32.totalorder %s816_s23, 1  ;;  %p192_p8 = scmp.lt.s32.totalorder %s816_s23, 5 }
   0xe   : > { %p193_p9 = pnand %p617_p7, %p192_p8 }
   0xf   : > { %v743_v0 = vld [vmem:[%s992_s1] sm:$0x1f] (!%p193_p9)   ;;  %vm321_vm0 = vcmask (!%p193_p9), 1044480   ;;  %s902_s8 = sshll.u32 (!%p193_p9), %s613_s4, 4  ;;  %vm296_vm1 = vcmask (!%p193_p9), 80896   ;;  %v818_v12 = vmov (!%p193_p9), 0.0  }
  0x10   : > { %196 = sbr.rel (%p193_p9) target bundleno = 542 (0x21e), region = 40  ;;  %v752_v1 = vld [vmem:[%s994_s3] sm:$0xff] (!%p193_p9)   ;;  %700 = vmatprep.subr.msk.bf16.mxu0 (!%p193_p9), %vm321_vm0, %v743_v0  ;;  %v323_v2 = vsel (!%p193_p9), %vm321_vm0, %v743_v0, 0  ;;  %p220_p10 = scmp.lt.s32.totalorder (!%p193_p9), %s902_s8, 63  ;;  %680 = vmatprep.subr.bf16.mxu1 (!%p193_p9), %v818_v12  ;;  %vm819_vm2 = vmmov (!%p193_p9), 0   ;;  %vm477_vm3 = vcmask (!%p193_p9), 162816  }
  0x11   : > { %663 = vmatpush3.bf16.msra.mxu0 (!%p193_p9), %v323_v2  ;;  %461 = vxpose.xlu0.c.b16.start [1/2] (short) (narrow) (!%p193_p9), %v752_v1, 16  ;;  %v753_v3 = vld [vmem:[%s994_s3 + $0x8] ss:$0 sps:$4 sm:$0x33] (!%p193_p9)   ;;  %v620_v13 = vld [vmem:[%s993_s2] ss:$0 sm:$0xff] (!%p193_p9)  ;;  %s949_s9 = scalar_lea.hbm (!%p193_p9), %s996_s5, %s902_s8 }
  0x12   : > { %696 = vmatprep.mubr.msk.bf16.mxu1 (!%p193_p9), %vm819_vm2, %v818_v12  ;;  %s449_s4 = sld [smem:[#allocation2]] (!%p193_p9)  ;;  %s217_s24 = sand.u32 (!%p193_p9), 1, %s808_s21  }
  0x13   : > { %s218_s26 = scalar_lea.vmem (!%p193_p9), [#allocation3], %s217_s24  ;;  %s547_s10 = scalar_lea.sflag (!%p193_p9), [#allocation4], %s217_s24 }
  0x14   : > { %s559_s27 = sshll.u32 (!%p193_p9), %s218_s26, 4  ;;  %s820_s12 = smov (!%p193_p9), [#allocation3]   ;;  %s951_s27 = int_to_ptr.vmem [resolvable:$true] %s559_s27 }
  0x15   : > { %462 = vxpose.xlu0.c.b16.end [2/2] (short) (narrow) (!%p193_p9), %v753_v3, 16  ;;  %s754_s11 = scalar_lea.vmem (!%p193_p9), %s951_s27, 16 }
  0x16   : > { %p755_p11 = scmp.ne.s32.totalorder (!%p193_p9), %s951_s27, %s754_s11 }
  0x17   : > { %s221_s13 = scalar_select %p220_p10, %s902_s8, 63 }
  0x18   : > { %p756_p12 = pnand %p755_p11, %p889_p5 }
  0x19   : > { %s619_s14 = sshll.u32 %s221_s13, 2  ;;  %s758_s13 = sshll.u32 %s820_s12, 4  ;;  %s759_s13 = int_to_ptr.vmem [resolvable:$false] %s758_s13 }
  0x1a   : > { %s223_s17 = scalar_lea.vmem %s991_s0, %s619_s14  ;;  %p757_p13 = pneg %p756_p12 }
  0x1b   : > { %v744_v4 = vld [vmem:[%s223_s17] sm:$0xff]   ;;  %v745_v5 = vld [vmem:[%s223_s17 + $0x8] sm:$0xff]   ;;  %v746_v6 = vld [vmem:[%s223_s17 + $0x10] sm:$0xff]   ;;  %s760_s14 = scalar_lea.vmem %s759_s13, 32  ;;  %p761_p0 = scmp.lt.s32.totalorder %s951_s27, %s759_s13 }
  0x1c   : > { %664 = vmatprep.mubr.msk.bf16.mxu0 %vm296_vm1, %v744_v4  ;;  %v747_v7 = vld [vmem:[%s223_s17 + $0x18] sm:$0xff]   ;;  %v748_v8 = vld [vmem:[%s223_s17 + $0x20] sm:$0xff]   ;;  %v749_v9 = vld [vmem:[%s223_s17 + $0x28] sm:$0xff]   ;;  %p762_p1 = scmp.lt.s32.totalorder %s760_s14, %s754_s11 }
  0x1d   : > { %665 = vmatmul.mubr.msk.bf16.vlgmr.msra.gmra.mrb[0].mxu0 %vm296_vm1, %v745_v5  ;;  %v750_v10 = vld [vmem:[%s223_s17 + $0x30] sm:$0xff]   ;;  %v751_v11 = vld [vmem:[%s223_s17 + $0x38] sm:$0xff]  }
  0x1e   : > { %668 = vmatprep.mubr.msk.bf16.mxu0 %vm296_vm1, %v746_v6  ;;  %p763_p2 = por %p762_p1, %p761_p0 }
  0x20   : > { %p764_p3 = pnand %p763_p2, %p757_p13 }
  0x25   : > { %669 = vmatmul.mubr.msk.bf16.gmra.mrb[4].mxu0 %vm296_vm1, %v747_v7 }
  0x26   : > { %672 = vmatprep.mubr.msk.bf16.mxu0 %vm296_vm1, %v748_v8 }
  0x2d   : > { %673 = vmatmul.mubr.msk.bf16.gmra.mrb[8].mxu0 %vm296_vm1, %v749_v9 }
  0x2e   : > { %676 = vmatprep.mubr.msk.bf16.mxu0 %vm296_vm1, %v750_v10 }
  0x35   : > { %677 = vmatmul.mubr.msk.bf16.gmra.mrb[12].mxu0 %vm296_vm1, %v751_v11 }
  0xf0   : > { %v666_v14 = vpop.f32.mrb[0].mxu0 }
  0xf1   : > { %v368_v15 = vadd.f32 %v666_v14, %v620_v13  ;;  %v359_v16 = vpop.f32.mrb[1].mxu0 }
  0xf2   : > { %v360_v17 = vadd.f32 %v620_v13, %v359_v16  ;;  %v667_v18 = vpop.f32.mrb[2].mxu0  ;;  %v450_v16 = vstv %s449_s4 }
  0xf3   : > { %v371_v19 = vadd.f32 %v667_v18, %v620_v13  ;;  %v362_v20 = vpop.f32.mrb[3].mxu0  ;;  %v424_v22 = vmax.f32 %v368_v15, 0.0  ;;  %v469_v15 = vpop.trf.xlu0 }
  0xf4   : > { %v363_v21 = vadd.f32 %v620_v13, %v362_v20  ;;  %v422_v24 = vmax.f32 %v360_v17, 0.0 }
  0xf5   : > { %v425_v23 = vmax.f32 %v371_v19, 0.0 }
  0xf6   : > { %v423_v25 = vmax.f32 %v363_v21, 0.0 }
  0xf7   : > { %v442_v26 = vpack.c.bf16 %v425_v23, %v424_v22 }
  0xf8   : > { %v441_v27 = vpack.c.bf16 %v423_v25, %v422_v24  ;;  %v670_v28 = vpop.f32.mrb[4].mxu0 }
  0xf9   : > { %v384_v29 = vadd.f32 %v670_v28, %v620_v13  ;;  %v375_v30 = vpop.f32.mrb[5].mxu0  ;;  %v485_v46 = vsel %vm477_vm3, %v442_v26, 0 }
  0xfa   : > { %v482_v31 = vsel %vm477_vm3, %v441_v27, 0  ;;  %v376_v32 = vadd.f32 %v620_v13, %v375_v30  ;;  %v671_v33 = vpop.f32.mrb[6].mxu0 }
  0xfb   : > { %681 = vmatpush3.bf16.xpose.msra.mxu1 %v482_v31  ;;  %v428_v34 = vmax.f32 %v384_v29, 0.0  ;;  %v387_v35 = vadd.f32 %v671_v33, %v620_v13  ;;  %v378_v36 = vpop.f32.mrb[7].mxu0 }
  0xfc   : > { %v426_v37 = vmax.f32 %v376_v32, 0.0  ;;  %v379_v38 = vadd.f32 %v620_v13, %v378_v36  ;;  %682 = vmatprep.subr.bf16.mxu1 %v818_v12 }
  0xfd   : > { %v429_v39 = vmax.f32 %v387_v35, 0.0 }
  0xfe   : > { %v427_v40 = vmax.f32 %v379_v38, 0.0 }
  0xff   : > { %v444_v41 = vpack.c.bf16 %v429_v39, %v428_v34 }
 0x100   : > { %v443_v42 = vpack.c.bf16 %v427_v40, %v426_v37  ;;  %v674_v43 = vpop.f32.mrb[8].mxu0 }
 0x101   : > { %v400_v44 = vadd.f32 %v674_v43, %v620_v13  ;;  %v391_v45 = vpop.f32.mrb[9].mxu0  ;;  %v491_v9 = vsel %vm477_vm3, %v444_v41, 0 }
 0x102   : > { %v392_v47 = vadd.f32 %v620_v13, %v391_v45  ;;  %v675_v48 = vpop.f32.mrb[10].mxu0  ;;  %v488_v61 = vsel %vm477_vm3, %v443_v42, 0 }
 0x103   : > { %683 = vmatpush3.bf16.xpose.msra.mxu1 %v485_v46  ;;  %v432_v49 = vmax.f32 %v400_v44, 0.0  ;;  %v403_v50 = vadd.f32 %v675_v48, %v620_v13  ;;  %v394_v51 = vpop.f32.mrb[11].mxu0 }
 0x104   : > { %684 = vmatprep.subr.bf16.mxu1 %v818_v12  ;;  %v430_v52 = vmax.f32 %v392_v47, 0.0  ;;  %v395_v53 = vadd.f32 %v620_v13, %v394_v51 }
 0x105   : > { %v433_v54 = vmax.f32 %v403_v50, 0.0 }
 0x106   : > { %v431_v55 = vmax.f32 %v395_v53, 0.0 }
 0x107   : > { %v446_v56 = vpack.c.bf16 %v433_v54, %v432_v49 }
 0x108   : > { %v445_v57 = vpack.c.bf16 %v431_v55, %v430_v52  ;;  %v678_v58 = vpop.f32.mrb[12].mxu0 }
 0x109   : > { %v416_v59 = vadd.f32 %v678_v58, %v620_v13  ;;  %v407_v60 = vpop.f32.mrb[13].mxu0  ;;  %v497_v11 = vsel %vm477_vm3, %v446_v56, 0 }
 0x10a   : > { %v408_v62 = vadd.f32 %v620_v13, %v407_v60  ;;  %v679_v63 = vpop.f32.mrb[14].mxu0  ;;  %v494_v10 = vsel %vm477_vm3, %v445_v57, 0 }
 0x10b   : > { %685 = vmatpush3.bf16.xpose.msra.mxu1 %v488_v61  ;;  %v436_v0 = vmax.f32 %v416_v59, 0.0  ;;  %v419_v1 = vadd.f32 %v679_v63, %v620_v13  ;;  %v410_v2 = vpop.f32.mrb[15].mxu0 }
 0x10c   : > { %686 = vmatprep.subr.bf16.mxu1 %v818_v12  ;;  %v434_v3 = vmax.f32 %v408_v62, 0.0  ;;  %v411_v4 = vadd.f32 %v620_v13, %v410_v2 }
 0x10d   : > { %v437_v5 = vmax.f32 %v419_v1, 0.0 }
 0x10e   : > { %v435_v6 = vmax.f32 %v411_v4, 0.0 }
 0x10f   : > { %v448_v7 = vpack.c.bf16 %v437_v5, %v436_v0 }
 0x110   : > { %v447_v8 = vpack.c.bf16 %v435_v6, %v434_v3 }
 0x111   : > { %v503_v14 = vsel %vm477_vm3, %v448_v7, 0 }
 0x112   : > { %v500_v13 = vsel %vm477_vm3, %v447_v8, 0 }
 0x113   : > { %687 = vmatpush3.bf16.xpose.msra.mxu1 %v491_v9 }
 0x114   : > { %688 = vmatprep.subr.bf16.mxu1 %v818_v12 }
 0x11b   : > { %689 = vmatpush3.bf16.xpose.msra.mxu1 %v494_v10 }
 0x11c   : > { %690 = vmatprep.subr.bf16.mxu1 %v818_v12 }
 0x123   : > { %691 = vmatpush3.bf16.xpose.msra.mxu1 %v497_v11 }
 0x124   : > { %692 = vmatprep.subr.bf16.mxu1 %v818_v12 }
 0x12b   : > { %693 = vmatpush3.bf16.xpose.msra.mxu1 %v500_v13 }
 0x12c   : > { %694 = vmatprep.subr.bf16.mxu1 %v818_v12 }
 0x133   : > { %695 = vmatpush3.bf16.xpose.msra.mxu1 %v503_v14 }
 0x13a   : > { %697 = vmatmul.mubr.msk.bf16.vlgmr.msra.gmra.mrb[0].mxu1 %vm477_vm3, %v469_v15 }
 0x20d   : > { %v539_v17 = vpop.f32.mrb[0].mxu1 }
 0x20e   : > { %v540_v18 = vadd.f32 %v539_v17, %v450_v16  ;;  %v698_v19 = vpop.f32.mrb[1].mxu1 }
 0x20f   : > { %v542_v12 = vpop.f32.mrb[2].mxu1 }
 0x210   : > { %545 = vst [vmem:[%s218_s26] sm:$0x1] %v540_v18  ;;  %v699_v20 = vpop.f32.mrb[3].mxu1 }
 0x211   : > { %767 = shalt.err (!%p764_p3)
}
 0x212   : > { %s768_s8 = scalar_lea.hbm %s949_s9, 16  ;;  %s772_s17 = scalar_lea.hbm %s996_s5, 64 }
 0x213   : > { %p769_p4 = scmp.ne.s32.totalorder %s949_s9, %s768_s8  ;;  %p773_p9 = scmp.lt.u32.totalorder %s949_s9, %s996_s5 }
 0x214   : > { %p774_p10 = scmp.lt.u32.totalorder %s772_s17, %s768_s8  ;;  %p776_p12 = scmp.lt.u32.totalorder %s768_s8, %s949_s9 }
 0x215   : > { %p770_p7 = pnand %p769_p4, %p889_p5 }
 0x216   : > { %p775_p11 = por %p774_p10, %p773_p9 }
 0x217   : > { %p771_p8 = pneg %p770_p7 }
 0x218   : > { %p777_p13 = por %p776_p12, %p775_p11 }
 0x21a   : > { %p778_p0 = pnand %p777_p13, %p771_p8 }
 0x21c   : > { %781 = shalt.err (!%p778_p0)
}
 0x21d   : > { %701 = dma.vmem_to_hbm [thread:$0]  (%p889_p5), %s951_s27, 16, %s949_s9, %s547_s10  }
 0x21e PF: > { %p707_p1 = scmp.ge.s32.totalorder %s816_s23, 2  ;;  %s571_s4 = sand.u32 1, %s804_s20  }
 0x21f   : > { %s572_s24 = scalar_lea.sflag [#allocation4], %s571_s4 }
 0x220   : > { %p704_p2 = pnand %p707_p1, %p893_p6 }
 0x222   : > { %799 = dma.done.wait (!%p704_p2), %s572_s24, 16  }
 0x223   : > { %801 = vsyncadd (!%p704_p2), %s572_s24, 4294967280  ;;  %p16_p3 = scmp.ge.s32.totalorder %s877_s25, 6   ;;  %s999_s20 = smov %s808_s21 }
 0x224   : > { %s1000_s21 = smov %s812_s22  ;;  %s1001_s22 = smov %s887_s28 }
 0x225   : > { %s1002_s23 = smov %s877_s25  ;;  %18 = sbr.rel (!%p16_p3) target bundleno = 5 (0x5), region = 75 }
 0x22c   :  { %576 = vsyncpa [#allocation4], 1 }
 0x22d   :  { %578 = vsyncpa [#allocation4 + $0x1], 1 }

</bundles_post_ra>
